<compile_context>
chip_gen: v6e
topology: v6e:2x2x1
jax: 0.10.0
libtpu: 0.0.40
codegen_flags: <defaults>
</compile_context>

<pallas_src>
import functools

import numpy as np
import jax
import jax.numpy as jnp
from jax.experimental import pallas as pl
from jax.experimental.pallas import tpu as pltpu

_TM_CAP, _TN_CAP, _TK_CAP = 512, 512, 2048
_VMEM_LIMIT = 32 * 1024 * 1024


def _rup(x, m):
    return ((x + m - 1) // m) * m


def _tile(size, align, cap):
    """Balanced tile (multiple of `align`, <= cap) and the padded extent."""
    p = _rup(size, align)
    steps = -(-p // cap)
    t = _rup(-(-p // steps), align)
    return t, t * steps


def _plan_m(M):
    if M <= _TM_CAP:
        return M, M                 # full-dim block: no row padding needed
    return _tile(M, 256, _TM_CAP)   # 256-aligned for the MXU


def _plan_k(K):
    if K <= _TK_CAP:
        return K, K                 # full-dim block: no K padding needed
    return _tile(K, 128, _TK_CAP)


def _plan_n(n):
    if n <= _TN_CAP:
        return n, n                 # full-dim block: no col padding needed
    return _tile(n, 128, _TN_CAP)


def _largest_divisor(n, cap):
    cap = max(1, min(n, cap))
    for d in range(cap, 0, -1):
        if n % d == 0:
            return d
    return 1


# ----------------------------------------------------------------------------------
# Pallas kernels
# ----------------------------------------------------------------------------------
def _mm_kernel(a_ref, b_ref, bias_ref, *rest, relu, has_res, single_k):
    if single_k:
        # No accumulator scratch / phase gating needed: one K step.
        if has_res:
            res_ref, o_ref = rest
        else:
            (o_ref,) = rest
            res_ref = None
        y = jnp.dot(a_ref[...], b_ref[...], preferred_element_type=jnp.float32)
        y = y + bias_ref[...]
        if has_res:
            y = y + res_ref[...].astype(jnp.float32)
        if relu:
            y = jnp.maximum(y, 0.0)
        o_ref[...] = y.astype(o_ref.dtype)
        return

    if has_res:
        res_ref, o_ref, acc_ref = rest
    else:
        o_ref, acc_ref = rest

    @pl.when(pl.program_id(2) == 0)
    def _():
        acc_ref[...] = jnp.zeros_like(acc_ref)

    acc_ref[...] += jnp.dot(a_ref[...], b_ref[...], preferred_element_type=jnp.float32)

    @pl.when(pl.program_id(2) == pl.num_programs(2) - 1)
    def _():
        y = acc_ref[...] + bias_ref[...]
        if has_res:
            y = y + res_ref[...].astype(jnp.float32)
        if relu:
            y = jnp.maximum(y, 0.0)
        o_ref[...] = y.astype(o_ref.dtype)


def _conv3x3_kernel(x_ref, b_ref, bias_ref, o_ref, *, Wq, R, relu):
    """Fused 3x3 conv on a halo'd row-tile of the flattened padded activation.

    x_ref:    (1, R + 2*Wq + 2, C)   rows = flattened (H+2, W+2) padded image
    b_ref:    (9, C, TN)             tap-major weights (BN folded)
    bias_ref: (1, TN)
    o_ref:    (R, TN)                output rows live on the same padded grid
    """
    acc = None
    for ky in range(3):
        for kx in range(3):
            a = x_ref[0, pl.ds(ky * Wq + kx, R), :]           # (R, C) shifted window
            d = jnp.dot(a, b_ref[ky * 3 + kx], preferred_element_type=jnp.float32)
            acc = d if acc is None else acc + d
    y = acc + bias_ref[...]
    if relu:
        y = jnp.maximum(y, 0.0)
    o_ref[...] = y.astype(o_ref.dtype)


def _pool_kernel(x_ref, o_ref):
    # x_ref: (TR, 2, OW, 2*C)  ->  o_ref: (TR, OW, C)
    C = o_ref.shape[-1]
    v = x_ref[...]
    m = jnp.maximum(v[:, 0], v[:, 1])             # vertical 2-max
    o_ref[...] = jnp.maximum(m[:, :, :C], m[:, :, C:])   # horizontal 2-max


# ----------------------------------------------------------------------------------
# Pallas wrappers
# ----------------------------------------------------------------------------------
def matmul_fused(A, Bp, bias_p, n_out, relu=False, residual=None):
    """out[:M, :n_out] = relu?((A @ B) + bias (+ residual)).

    A: (M, K) bf16 activations, Bp: (Kp, Np) bf16 pre-padded weights,
    bias_p: (1, Np) f32 fused bias, residual: optional (M, n_out) bf16."""
    M, K = A.shape
    TK, Kp = _plan_k(K)
    TN, Np = _plan_n(n_out)
    TM, Mp = _plan_m(M)
    assert Bp.shape == (Kp, Np), (Bp.shape, Kp, Np)
    nk = Kp // TK
    single_k = nk == 1

    if (Mp != M) or (Kp != K):
        A = jnp.pad(A, ((0, Mp - M), (0, Kp - K)))

    in_arrays = [A, Bp, bias_p]
    in_specs = [
        pl.BlockSpec((TM, TK), lambda i, j, k: (i, k)),
        pl.BlockSpec((TK, TN), lambda i, j, k: (k, j)),
        pl.BlockSpec((1, TN), lambda i, j, k: (0, j)),
    ]
    has_res = residual is not None
    if has_res:
        assert Np == n_out, "residual fusion expects unpadded output channels"
        r = residual.astype(jnp.bfloat16)
        if Mp != M:
            r = jnp.pad(r, ((0, Mp - M), (0, 0)))
        in_arrays.append(r)
        in_specs.append(pl.BlockSpec((TM, TN), lambda i, j, k: (i, j)))

    scratch = [] if single_k else [pltpu.VMEM((TM, TN), jnp.float32)]

    out = pl.pallas_call(
        functools.partial(_mm_kernel, relu=relu, has_res=has_res, single_k=single_k),
        out_shape=jax.ShapeDtypeStruct((Mp, Np), jnp.bfloat16),
        grid_spec=pltpu.PrefetchScalarGridSpec(
            num_scalar_prefetch=0,
            grid=(Mp // TM, Np // TN, nk),
            in_specs=in_specs,
            out_specs=pl.BlockSpec((TM, TN), lambda i, j, k: (i, j)),
            scratch_shapes=scratch,
        ),
        compiler_params=pltpu.CompilerParams(
            dimension_semantics=("parallel", "parallel", "arbitrary"),
            vmem_limit_bytes=_VMEM_LIMIT),
    )(*in_arrays)
    if (Mp != M) or (Np != n_out):
        out = out[:M, :n_out]
    return out


def _plan_conv3x3(Pq, halo, C, O):
    """Pick (rows-per-tile R, n_tiles, TN) for the fused 3x3 conv kernel."""
    Cl = _rup(C, 128)
    TN = min(O, _TN_CAP)
    # keep the double-buffered weight block <= ~8 MiB, staying 128-aligned
    while TN >= 256 and TN % 256 == 0 and 36 * C * _rup(TN, 128) > 8 * 2 ** 20:
        TN //= 2
    TNl = _rup(TN, 128)
    b_bytes = 2 * 9 * C * TNl * 2
    per_row = 4 * Cl + 8 * TNl                    # x (dbuf bf16) + out (dbuf bf16) + acc f32
    budget = 10 * 2 ** 20 - b_bytes - 4 * halo * Cl
    R = max(8, min(budget // per_row, _rup(Pq, 8), 4096))
    R = max(8, (R // 8) * 8)
    n_tiles = -(-Pq // R)
    return R, n_tiles, TN


def conv3x3_fused(x, p, relu=False):
    """Fused 3x3 / stride-1 / pad-1 conv + folded BN + ReLU (no im2col in HBM)."""
    N, H, W, C = x.shape
    O = p["n_out"]
    B3, bias = p["B3"], p["bias"]                 # (9, C, O) bf16, (1, O) f32
    Hq, Wq = H + 2, W + 2
    Pq = Hq * Wq
    halo = 2 * Wq + 2
    R, n_tiles, TN = _plan_conv3x3(Pq, halo, C, O)
    assert O % TN == 0
    n_ot = O // TN

    # Flatten the zero-padded image and cut it into row tiles with a duplicated halo
    # (the only activation copy this path makes; ~(1 + halo/R)x of the activation).
    x_pad = jnp.pad(x, ((0, 0), (1, 1), (1, 1), (0, 0)))
    Xf = x_pad.reshape(N, Pq, C)
    need = n_tiles * R + halo
    Xf = jnp.pad(Xf, ((0, 0), (0, need - Pq), (0, 0)))
    if n_tiles == 1:
        Xt = Xf                                    # already (N, R + halo, C)
    else:
        Xt = jnp.stack([Xf[:, r * R:r * R + R + halo, :] for r in range(n_tiles)], axis=1)
        Xt = Xt.reshape(N * n_tiles, R + halo, C)

    out = pl.pallas_call(
        functools.partial(_conv3x3_kernel, Wq=Wq, R=R, relu=relu),
        out_shape=jax.ShapeDtypeStruct((N * n_tiles * R, O), jnp.bfloat16),
        grid_spec=pltpu.PrefetchScalarGridSpec(
            num_scalar_prefetch=0,
            grid=(n_ot, N * n_tiles),              # O-tiles outer => weights DMA'd once
            in_specs=[
                pl.BlockSpec((1, R + halo, C), lambda j, i: (i, 0, 0)),
                pl.BlockSpec((9, C, TN), lambda j, i: (0, 0, j)),
                pl.BlockSpec((1, TN), lambda j, i: (0, j)),
            ],
            out_specs=pl.BlockSpec((R, TN), lambda j, i: (i, j)),
        ),
        compiler_params=pltpu.CompilerParams(
            dimension_semantics=("parallel", "parallel"),
            vmem_limit_bytes=_VMEM_LIMIT),
    )(Xt, B3, bias)

    y = out.reshape(N, n_tiles * R, O)[:, :Pq, :]
    y = y.reshape(N, Hq, Wq, O)[:, :H, :W, :]
    return y


def _im2col(x, kh, kw, pad):
    """x: (N,H,W,C) NHWC -> (N*OH*OW, kh*kw*C); patch element order = (ky, kx, c)."""
    N, H, W, C = x.shape
    if pad:
        x = jnp.pad(x, ((0, 0), (pad, pad), (pad, pad), (0, 0)))
    OH = H + 2 * pad - kh + 1
    OW = W + 2 * pad - kw + 1
    if kh == 1 and kw == 1:
        return x.reshape(N * OH * OW, C), OH, OW
    cols = [x[:, ky:ky + OH, kx:kx + OW, :] for ky in range(kh) for kx in range(kw)]
    patches = jnp.stack(cols, axis=3)  # (N, OH, OW, kh*kw, C)
    return patches.reshape(N * OH * OW, kh * kw * C), OH, OW


def conv2d(x, p, relu=False, residual=None):
    """x: NHWC bf16; p: prepared layer dict. Optional fused residual add (NHWC)."""
    if p["kind"] == "fused3x3":
        assert residual is None
        return conv3x3_fused(x, p, relu=relu)
    N = x.shape[0]
    A, OH, OW = _im2col(x, p["kh"], p["kw"], p["pad"])
    res2 = None
    if residual is not None:
        res2 = residual.reshape(N * OH * OW, p["n_out"])
    y = matmul_fused(A, p["B"], p["bias"], p["n_out"], relu=relu, residual=res2)
    return y.reshape(N, OH, OW, p["n_out"])


def conv_transpose2d(x, p):
    """Sub-pixel transposed conv (requires k == 2*stride, pad == stride/2)."""
    s, O = p["stride"], p["n_out"]
    N, H, W, _ = x.shape
    A, _, _ = _im2col(x, 3, 3, 1)                       # (N*H*W, 9*C)
    y = matmul_fused(A, p["B"], p["bias"], s * s * O)   # (N*H*W, s*s*O)
    # TODO(synk): fuse this pixel-shuffle into the matmul out_spec (phase grid axis).
    y = y.reshape(N, H, W, s, s, O).transpose(0, 1, 3, 2, 4, 5)
    return y.reshape(N, H * s, W * s, O)


def maxpool2x2_ceil(x):
    N, H, W, C = x.shape
    OH, OW = -(-H // 2), -(-W // 2)
    if (2 * OH != H) or (2 * OW != W):
        # TODO(synk): odd spatial dims take one -inf pad copy; could be masked in-kernel.
        x = jnp.pad(x, ((0, 0), (0, 2 * OH - H), (0, 2 * OW - W), (0, 0)),
                    constant_values=-jnp.inf)
    xr = x.reshape(N * OH, 2, OW, 2 * C)                 # free reshape, no slabs
    rows = N * OH
    per_row = 20 * OW * max(C, 64)                        # ~bytes/row incl. double buffers
    cap = max(1, (10 * 2 ** 20) // per_row)
    TR = rows if rows <= cap else _largest_divisor(rows, cap)

    out = pl.pallas_call(
        _pool_kernel,
        out_shape=jax.ShapeDtypeStruct((rows, OW, C), x.dtype),
        grid_spec=pltpu.PrefetchScalarGridSpec(
            num_scalar_prefetch=0,
            grid=(rows // TR,),
            in_specs=[pl.BlockSpec((TR, 2, OW, 2 * C), lambda i: (i, 0, 0, 0))],
            out_specs=pl.BlockSpec((TR, OW, C), lambda i: (i, 0, 0)),
        ),
        compiler_params=pltpu.CompilerParams(
            dimension_semantics=("parallel",),
            vmem_limit_bytes=_VMEM_LIMIT),
    )(xr)
    return out.reshape(N, OH, OW, C)


# ----------------------------------------------------------------------------------
# Parameter init + one-time weight preparation (matmul layout, BN fold, pad, bf16)
# ----------------------------------------------------------------------------------
def _pad_kn(B, bias, K, n_out):
    _, Kp = _plan_k(K)
    _, Np = _plan_n(n_out)
    Bp = B.astype(jnp.bfloat16)
    if (Kp != K) or (Np != n_out):
        Bp = jnp.pad(Bp, ((0, Kp - K), (0, Np - n_out)))
    bp = bias.astype(jnp.float32)
    if Np != n_out:
        bp = jnp.pad(bp, (0, Np - n_out))
    return Bp, bp.reshape(1, Np)


def _prep_conv(w, b, pad, scale=None, shift=None):
    O, I, kh, kw = w.shape
    B = jnp.transpose(w, (2, 3, 1, 0)).reshape(kh * kw * I, O)  # rows = (ky, kx, c)
    if scale is not None:          # fold BN (inference) into weight + bias
        B = B * scale[None, :]
        b = b * scale + shift
    if kh == 3 and kw == 3 and pad == 1 and I >= 16:
        return {"kind": "fused3x3", "n_out": O,
                "B3": B.astype(jnp.bfloat16).reshape(9, I, O),
                "bias": b.astype(jnp.float32).reshape(1, O)}
    Bp, bp = _pad_kn(B, b, kh * kw * I, O)
    return {"kind": "im2col", "B": Bp, "bias": bp,
            "kh": kh, "kw": kw, "pad": pad, "n_out": O}


def _prep_deconv(w, b, stride):
    """Sub-pixel weights: (3x3 neighbourhood, C_in) -> (stride^2 phases, C_out)."""
    I, O, k, _ = w.shape
    s = stride
    assert k == 2 * s, "sub-pixel path requires kernel_size == 2*stride"
    half = s // 2                                   # == padding in this model
    w_np = np.asarray(w, np.float32)
    Wb = np.zeros((3, 3, I, s, s, O), np.float32)   # (dh, dw, i, rh, rw, o)
    for rh in range(s):
        taps_h = [(1, rh + half)]                   # centre input row
        taps_h.append((0, rh + s + half) if rh < half else (2, rh - half))
        for rw in range(s):
            taps_w = [(1, rw + half)]
            taps_w.append((0, rw + s + half) if rw < half else (2, rw - half))
            for dh, kh_ in taps_h:
                for dw, kw_ in taps_w:
                    Wb[dh, dw, :, rh, rw, :] = w_np[:, :, kh_, kw_]
    B = jnp.asarray(Wb.reshape(9 * I, s * s * O))
    bias = jnp.tile(b, s * s)
    Bp, bp = _pad_kn(B, bias, 9 * I, s * s * O)
    return {"kind": "deconv", "B": Bp, "bias": bp, "stride": s, "n_out": O}


def init_params(key, in_channels, num_classes):
    conv_layers = [
        ("block1_conv1", 64, in_channels, 3, 1, True), ("block1_conv2", 64, 64, 3, 1, True),
        ("block2_conv1", 128, 64, 3, 1, True), ("block2_conv2", 128, 128, 3, 1, True),
        ("block3_conv1", 256, 128, 3, 1, True), ("block3_conv2", 256, 256, 3, 1, True),
        ("block3_conv3", 256, 256, 3, 1, True),
        ("block4_conv1", 512, 256, 3, 1, True), ("block4_conv2", 512, 512, 3, 1, True),
        ("block4_conv3", 512, 512, 3, 1, True),
        ("block5_conv1", 512, 512, 3, 1, True), ("block5_conv2", 512, 512, 3, 1, True),
        ("block5_conv3", 512, 512, 3, 1, True),
        ("block6_conv1", 4096, 512, 7, 3, True),
        ("block7_conv1", 4096, 4096, 1, 0, True),
        ("up3_conv", num_classes, 256, 1, 0, False),
        ("up4_conv", num_classes, 512, 1, 0, False),
        ("up7_conv", num_classes, 4096, 1, 0, False),
    ]
    keys = jax.random.split(key, len(conv_layers) + 3)
    params = {}
    for (name, O, I, ks, pad, bn), k in zip(conv_layers, keys[:len(conv_layers)]):
        k1, k2, k3, k4 = jax.random.split(k, 4)
        fan_in = I * ks * ks
        w = jax.random.normal(k1, (O, I, ks, ks), jnp.float32) / jnp.sqrt(fan_in)
        b = 0.01 * jax.random.normal(k2, (O,), jnp.float32)
        if bn:
            gamma = 1.0 + 0.1 * jax.random.normal(k3, (O,), jnp.float32)
            beta = 0.1 * jax.random.normal(k4, (O,), jnp.float32)
            scale = gamma / jnp.sqrt(1.0 + 1e-5)    # running_var = 1
            shift = beta                             # running_mean = 0
            params[name] = _prep_conv(w, b, pad, scale, shift)
        else:
            params[name] = _prep_conv(w, b, pad)

    for (name, ksz, stride), k in zip(
            [("up3_deconv", 16, 8), ("up4_deconv", 4, 2), ("up7_deconv", 4, 2)],
            keys[len(conv_layers):]):
        k1, k2 = jax.random.split(k, 2)
        fan_in = num_classes * ksz * ksz
        w = jax.random.normal(k1, (num_classes, num_classes, ksz, ksz),
                              jnp.float32) / jnp.sqrt(fan_in)
        b = 0.01 * jax.random.normal(k2, (num_classes,), jnp.float32)
        params[name] = _prep_deconv(w, b, stride)
    return params


# ----------------------------------------------------------------------------------
# Forward pass
# ----------------------------------------------------------------------------------
def fcn8s_forward(params, x_nchw):
    h = jnp.transpose(x_nchw, (0, 2, 3, 1)).astype(jnp.bfloat16)  # NCHW -> NHWC bf16

    def cbr(h, name):
        return conv2d(h, params[name], relu=True)

    h = cbr(h, "block1_conv1"); h = cbr(h, "block1_conv2"); h = maxpool2x2_ceil(h)
    h = cbr(h, "block2_conv1"); h = cbr(h, "block2_conv2"); h = maxpool2x2_ceil(h)
    h = cbr(h, "block3_conv1"); h = cbr(h, "block3_conv2"); h = cbr(h, "block3_conv3")
    h = maxpool2x2_ceil(h); f3 = h
    h = cbr(h, "block4_conv1"); h = cbr(h, "block4_conv2"); h = cbr(h, "block4_conv3")
    h = maxpool2x2_ceil(h); f4 = h
    h = cbr(h, "block5_conv1"); h = cbr(h, "block5_conv2"); h = cbr(h, "block5_conv3")
    h = maxpool2x2_ceil(h)
    h = cbr(h, "block6_conv1")
    h = cbr(h, "block7_conv1")
    f7 = h

    h = conv2d(f7, params["up7_conv"])                       # score from f7
    h = conv_transpose2d(h, params["up7_deconv"])            # x2
    h = conv2d(f4, params["up4_conv"], residual=h)           # score(f4) + h  (fused add)
    h = conv_transpose2d(h, params["up4_deconv"])            # x2
    h = conv2d(f3, params["up3_conv"], residual=h)           # score(f3) + h  (fused add)
    h = conv_transpose2d(h, params["up3_deconv"])            # x8

    return jnp.transpose(h, (0, 3, 1, 2)).astype(jnp.float32)  # back to NCHW f32


# ----------------------------------------------------------------------------------
if __name__ == "__main__":
    key = jax.random.PRNGKey(0)
    k_param, k_in = jax.random.split(key)

    batch, in_channels, hw, num_classes = 2, 3, 32, 5
    params = init_params(k_param, in_channels, num_classes)
    x = jax.random.normal(k_in, (batch, in_channels, hw, hw), jnp.float32)

    y = fcn8s_forward(params, x)
    y = jax.block_until_ready(y)

    assert y.shape == (batch, num_classes, hw, hw), y.shape
    assert bool(jnp.all(jnp.isfinite(y)))
    print("KERNEL_OK")
</pallas_src>

<mosaic_0001>
module attributes {stable_mosaic.version = 11 : i64} {
  func.func @_mm_kernel(%arg0: i32, %arg1: i32, %arg2: i32, %arg3: memref<512x27xbf16, #tpu.memory_space<vmem>>, %arg4: memref<27x64xbf16, #tpu.memory_space<vmem>>, %arg5: memref<1x64xf32, #tpu.memory_space<vmem>>, %arg6: memref<512x64xbf16, #tpu.memory_space<vmem>>) attributes {dimension_semantics = [#tpu.dimension_semantics<parallel>, #tpu.dimension_semantics<parallel>, #tpu.dimension_semantics<arbitrary>], iteration_bounds = array<i64: 4, 1, 1>, scalar_prefetch = 0 : i64, scratch_operands = 0 : i64, tpu.core_type = #tpu.core_type<tc>, window_params = [{transform_indices = @transform_0, window_bounds = array<i64: 512, 27>}, {transform_indices = @transform_1, window_bounds = array<i64: 27, 64>}, {transform_indices = @transform_2, window_bounds = array<i64: 1, 64>}, {transform_indices = @transform_3, window_bounds = array<i64: 512, 64>}]} {
    %c0 = arith.constant 0 : index
    %c0_0 = arith.constant 0 : index
    %0 = vector.load %arg3[%c0, %c0_0] : memref<512x27xbf16, #tpu.memory_space<vmem>>, vector<512x27xbf16>
    %c0_1 = arith.constant 0 : index
    %c0_2 = arith.constant 0 : index
    %1 = vector.load %arg4[%c0_1, %c0_2] : memref<27x64xbf16, #tpu.memory_space<vmem>>, vector<27x64xbf16>
    %cst = arith.constant dense<0.000000e+00> : vector<512x64xf32>
    %2 = tpu.matmul %0, %1, %cst {dimension_numbers = #tpu.dot_dimension_numbers<[1], [0], [0], [1], [0, 0, 1, 1], [], []>} : vector<512x27xbf16>, vector<27x64xbf16>, vector<512x64xf32> -> vector<512x64xf32>
    %c0_3 = arith.constant 0 : index
    %c0_4 = arith.constant 0 : index
    %3 = vector.load %arg5[%c0_3, %c0_4] : memref<1x64xf32, #tpu.memory_space<vmem>>, vector<1x64xf32>
    %4 = vector.broadcast %3 : vector<1x64xf32> to vector<512x64xf32>
    %5 = arith.addf %2, %4 : vector<512x64xf32>
    %cst_5 = arith.constant 0.000000e+00 : f32
    %6 = vector.broadcast %cst_5 : f32 to vector<512x64xf32>
    %7 = arith.maximumf %5, %6 : vector<512x64xf32>
    %8 = arith.truncf %7 : vector<512x64xf32> to vector<512x64xbf16>
    %c0_6 = arith.constant 0 : index
    %c0_7 = arith.constant 0 : index
    %9 = vector.load %arg6[%c0_6, %c0_7] : memref<512x64xbf16, #tpu.memory_space<vmem>>, vector<512x64xbf16>
    tpu.vector_store %arg6[%c0_6, %c0_7], %8 {strides = array<i32>} : memref<512x64xbf16, #tpu.memory_space<vmem>>, vector<512x64xbf16>,
    return
  }
  func.func @transform_0(%arg0: i32, %arg1: i32, %arg2: i32) -> (i32, i32) {
    %c0_i32 = arith.constant 0 : i32
    return %arg0, %arg2 : i32, i32
  }
  func.func @transform_1(%arg0: i32, %arg1: i32, %arg2: i32) -> (i32, i32) {
    %c0_i32 = arith.constant 0 : i32
    return %arg2, %arg1 : i32, i32
  }
  func.func @transform_2(%arg0: i32, %arg1: i32, %arg2: i32) -> (i32, i32) {
    %c0_i32 = arith.constant 0 : i32
    %c0_i32_0 = arith.constant 0 : i32
    return %c0_i32, %arg1 : i32, i32
  }
  func.func @transform_3(%arg0: i32, %arg1: i32, %arg2: i32) -> (i32, i32) {
    %c0_i32 = arith.constant 0 : i32
    return %arg0, %arg1 : i32, i32
  }
}

</mosaic_0001>

<bundles_post_ra>
// kernel: tpu_custom_call.1
= control target key start
LH: loop header
LB: loop body
LE: loop exit
PB: predicated region body
PF: predicated region fallthrough
CT: control target
= control target key end

     0   :  { %s1813_s12 = smov 0   ;;  %s1815_s13 = smov 0   ;;  %s2124_s0 = inlined_call_operand.vmem [shape: bf16[2048,27], index: 0, kind: input, shape index: {}]   ;;  %s2125_s1 = inlined_call_operand.vmem [shape: bf16[27,64], index: 1, kind: input, shape index: {}]   ;;  %s2126_s2 = inlined_call_operand.vmem [shape: f32[1,64], index: 2, kind: input, shape index: {}]   ;;  %s2127_s3 = inlined_call_operand.vmem [shape: bf16[2048,64], index: 3, kind: output, shape index: {}]  }
   0x1   :  { %s1817_s14 = smov 0  }
   0x2 LB: > { %s32_s15 = sadd.s32 1, %s1786_s13  ;;  %p1401_p0 = scmp.ge.s32.totalorder %s1790_s14, 1  ;;  %s1790_s14 = sphi %s1817_s14, %s13_s14   ;;  %s1786_s13 = sphi %s1815_s13, %s2129_s13   ;;  %s1782_s12 = sphi %s1813_s12, %s2128_s12  }
   0x3   : > { %p34_p1 = scmp.ge.s32.totalorder %s32_s15, 4  ;;  %p188_p2 = scmp.lt.s32.totalorder %s1790_s14, 5 }
   0x5   : > { %s2131_s15 = smov (%p34_p1, %s32_s15), 0  ;;  %p189_p3 = pnand %p1401_p0, %p188_p2 }
   0x6   : > { %s1402_s18 = sshll.u32 (!%p189_p3), %s1782_s12, 6 }
   0x7   : > { %192 = sbr.rel (%p189_p3) target bundleno = 287 (0x11f), region = 32  ;;  %p230_p4 = scmp.lt.s32.totalorder (!%p189_p3), %s1402_s18, 255 }
   0xc   : > { %v1734_v0 = vld [vmem:[%s2125_s1 + $0x8] sm:$0x3f]   ;;  %vm603_vm0 = vcmask 1044480   ;;  %vm604_vm1 = vcmask 1045504   ;;  %v1792_v1 = vmov 65535   ;;  %v1735_v5 = vld [vmem:[%s2125_s1] sm:$0xff]  }
   0xd   : > { %v605_v2 = vsel %vm603_vm0, 4294967295, %v1792_v1  ;;  %s2133_s18 = smov (!%p230_p4, %s1402_s18), 255  ;;  %vm506_vm2 = vcmask 220160   ;;  %v1914_v38 = vld [vmem:[%s2126_s2] ss:$0 sm:$0xff]  ;;  %vm1219_vm3 = vcmask 519168  }
   0xe   : > { %v606_v3 = vsel %vm604_vm1, %v605_v2, 0  ;;  %s1403_s21 = sshll.u32 %s2133_s18, 2 }
   0xf   : > { %v608_v4 = vand.u32 %v1734_v0, %v606_v3  ;;  %s1845_s24 = scalar_lea.vmem %s2124_s0, %s1403_s21  ;;  %s1925_s29 = scalar_lea.vmem %s2127_s3, %s1403_s21 }
  0x10   : > { %v1736_v6 = vld [vmem:[%s1845_s24] sm:$0xff]   ;;  %v1738_v8 = vld [vmem:[%s1845_s24 + $0x8] sm:$0xff]   ;;  %v1740_v10 = vld [vmem:[%s1845_s24 + $0x10] sm:$0xff]  }
  0x11   : > { %1637 = vmatprep.subr.bf16.mxu0 %v608_v4  ;;  %1705 = vmatprep.subr.bf16.mxu1 %v608_v4  ;;  %v1737_v7 = vld [vmem:[%s1845_s24 + $0x80] sm:$0xff]   ;;  %v1739_v9 = vld [vmem:[%s1845_s24 + $0x88] sm:$0xff]   ;;  %v1741_v11 = vld [vmem:[%s1845_s24 + $0x90] sm:$0xff]  }
  0x12   : > { %1638 = vmatpush3.bf16.msra.mxu0 %v608_v4  ;;  %1707 = vmatpush3.bf16.msra.mxu1 %v608_v4  ;;  %v1742_v12 = vld [vmem:[%s1845_s24 + $0x18] sm:$0xff]   ;;  %v1744_v14 = vld [vmem:[%s1845_s24 + $0x20] sm:$0xff]   ;;  %v1746_v16 = vld [vmem:[%s1845_s24 + $0x28] sm:$0xff]  }
  0x13   : > { %1639 = vmatprep.subr.bf16.mxu0 %v1735_v5  ;;  %1706 = vmatprep.subr.bf16.mxu1 %v1735_v5  ;;  %v1743_v13 = vld [vmem:[%s1845_s24 + $0x98] sm:$0xff]   ;;  %v1745_v15 = vld [vmem:[%s1845_s24 + $0xa0] sm:$0xff]   ;;  %v1747_v17 = vld [vmem:[%s1845_s24 + $0xa8] sm:$0xff]  }
  0x14   : > { %1641 = vmatprep.mubr.msk.bf16.mxu0 %vm506_vm2, %v1736_v6  ;;  %1673 = vmatprep.mubr.msk.bf16.mxu1 %vm506_vm2, %v1737_v7  ;;  %v1748_v18 = vld [vmem:[%s1845_s24 + $0x30] sm:$0xff]   ;;  %v1750_v20 = vld [vmem:[%s1845_s24 + $0x38] sm:$0xff]   ;;  %v1752_v22 = vld [vmem:[%s1845_s24 + $0x40] sm:$0xff]  }
  0x15   : > { %v1749_v19 = vld [vmem:[%s1845_s24 + $0xb0] sm:$0xff]   ;;  %v1751_v21 = vld [vmem:[%s1845_s24 + $0xb8] sm:$0xff]   ;;  %v1753_v23 = vld [vmem:[%s1845_s24 + $0xc0] sm:$0xff]  }
  0x16   : > { %1640 = vmatpush3.bf16.msra.mxu0 %v1735_v5  ;;  %1708 = vmatpush3.bf16.msra.mxu1 %v1735_v5  ;;  %v1754_v24 = vld [vmem:[%s1845_s24 + $0x48] sm:$0xff]   ;;  %v1756_v26 = vld [vmem:[%s1845_s24 + $0x50] sm:$0xff]   ;;  %v1758_v28 = vld [vmem:[%s1845_s24 + $0x58] sm:$0xff]  }
  0x17   : > { %v1755_v25 = vld [vmem:[%s1845_s24 + $0xc8] sm:$0xff]   ;;  %v1757_v27 = vld [vmem:[%s1845_s24 + $0xd0] sm:$0xff]   ;;  %v1759_v29 = vld [vmem:[%s1845_s24 + $0xd8] sm:$0xff]  }
  0x18   : > { %v1760_v30 = vld [vmem:[%s1845_s24 + $0x60] sm:$0xff]   ;;  %v1762_v32 = vld [vmem:[%s1845_s24 + $0x68] sm:$0xff]   ;;  %v1764_v34 = vld [vmem:[%s1845_s24 + $0x70] sm:$0xff]  }
  0x19   : > { %1642 = vmatmul.mubr.msk.bf16.vlgmr.msra.gmra.mxu0 %vm506_vm2, %v1738_v8  ;;  %1674 = vmatmul.mubr.msk.bf16.vlgmr.msra.gmra.mxu1 %vm506_vm2, %v1739_v9  ;;  %v1761_v31 = vld [vmem:[%s1845_s24 + $0xe0] sm:$0xff]   ;;  %v1763_v33 = vld [vmem:[%s1845_s24 + $0xe8] sm:$0xff]   ;;  %v1765_v35 = vld [vmem:[%s1845_s24 + $0xf0] sm:$0xff]  }
  0x1a   : > { %1645 = vmatprep.mubr.msk.bf16.mxu0 %vm506_vm2, %v1740_v10  ;;  %1677 = vmatprep.mubr.msk.bf16.mxu1 %vm506_vm2, %v1741_v11  ;;  %v1766_v36 = vld [vmem:[%s1845_s24 + $0x78] sm:$0xff]  }
  0x1b   : > { %v1767_v37 = vld [vmem:[%s1845_s24 + $0xf8] sm:$0xff]  }
  0x21   : > { %1646 = vmatmul.mubr.msk.bf16.gmra.mxu0 %vm506_vm2, %v1742_v12  ;;  %1678 = vmatmul.mubr.msk.bf16.gmra.mxu1 %vm506_vm2, %v1743_v13 }
  0x22   : > { %1649 = vmatprep.mubr.msk.bf16.mxu0 %vm506_vm2, %v1744_v14  ;;  %1681 = vmatprep.mubr.msk.bf16.mxu1 %vm506_vm2, %v1745_v15 }
  0x29   : > { %1650 = vmatmul.mubr.msk.bf16.gmra.mxu0 %vm506_vm2, %v1746_v16  ;;  %1682 = vmatmul.mubr.msk.bf16.gmra.mxu1 %vm506_vm2, %v1747_v17 }
  0x2a   : > { %1653 = vmatprep.mubr.msk.bf16.mxu0 %vm506_vm2, %v1748_v18  ;;  %1685 = vmatprep.mubr.msk.bf16.mxu1 %vm506_vm2, %v1749_v19 }
  0x31   : > { %1654 = vmatmul.mubr.msk.bf16.gmra.mxu0 %vm506_vm2, %v1750_v20  ;;  %1686 = vmatmul.mubr.msk.bf16.gmra.mxu1 %vm506_vm2, %v1751_v21 }
  0x32   : > { %1657 = vmatprep.mubr.msk.bf16.mxu0 %vm506_vm2, %v1752_v22  ;;  %1689 = vmatprep.mubr.msk.bf16.mxu1 %vm506_vm2, %v1753_v23 }
  0x39   : > { %1658 = vmatmul.mubr.msk.bf16.gmra.mxu0 %vm506_vm2, %v1754_v24  ;;  %1690 = vmatmul.mubr.msk.bf16.gmra.mxu1 %vm506_vm2, %v1755_v25 }
  0x3a   : > { %1661 = vmatprep.mubr.msk.bf16.mxu0 %vm506_vm2, %v1756_v26  ;;  %1693 = vmatprep.mubr.msk.bf16.mxu1 %vm506_vm2, %v1757_v27 }
  0x41   : > { %1662 = vmatmul.mubr.msk.bf16.gmra.mxu0 %vm506_vm2, %v1758_v28  ;;  %1694 = vmatmul.mubr.msk.bf16.gmra.mxu1 %vm506_vm2, %v1759_v29 }
  0x42   : > { %1665 = vmatprep.mubr.msk.bf16.mxu0 %vm506_vm2, %v1760_v30  ;;  %1697 = vmatprep.mubr.msk.bf16.mxu1 %vm506_vm2, %v1761_v31 }
  0x49   : > { %1666 = vmatmul.mubr.msk.bf16.gmra.mxu0 %vm506_vm2, %v1762_v32  ;;  %1698 = vmatmul.mubr.msk.bf16.gmra.mxu1 %vm506_vm2, %v1763_v33 }
  0x4a   : > { %1669 = vmatprep.mubr.msk.bf16.mxu0 %vm506_vm2, %v1764_v34  ;;  %1701 = vmatprep.mubr.msk.bf16.mxu1 %vm506_vm2, %v1765_v35 }
  0x51   : > { %1670 = vmatmul.mubr.msk.bf16.gmra.mxu0 %vm506_vm2, %v1766_v36  ;;  %1702 = vmatmul.mubr.msk.bf16.gmra.mxu1 %vm506_vm2, %v1767_v37 }
  0xd9   : > { %v1643_v39 = vpop.f32.mrf.mxu0  ;;  %v1675_v40 = vpop.f32.mrf.mxu1 }
  0xda   : > { %v653_v41 = vadd.f32 %v1643_v39, %v1914_v38  ;;  %v781_v42 = vadd.f32 %v1675_v40, %v1914_v38 }
  0xdb   : > { %v644_v43 = vpop.f32.mrf.mxu0  ;;  %v772_v44 = vpop.f32.mrf.mxu1 }
  0xdc   : > { %v901_v45 = vmax.f32 %v653_v41, 0.0  ;;  %v933_v46 = vmax.f32 %v781_v42, 0.0  ;;  %v645_v47 = vadd.f32 %v1914_v38, %v644_v43  ;;  %v773_v48 = vadd.f32 %v1914_v38, %v772_v44 }
  0xdd   : > { %v1644_v49 = vpop.f32.mrf.mxu0  ;;  %v1676_v50 = vpop.f32.mrf.mxu1 }
  0xde   : > { %v1541_v51 = vpack.c.bf16 %v901_v45, %v901_v45  ;;  %v1573_v52 = vpack.c.bf16 %v933_v46, %v933_v46  ;;  %v899_v53 = vmax.f32 %v645_v47, 0.0  ;;  %v931_v54 = vmax.f32 %v773_v48, 0.0 }
  0xdf   : > { %v656_v55 = vadd.f32 %v1644_v49, %v1914_v38  ;;  %v784_v56 = vadd.f32 %v1676_v50, %v1914_v38  ;;  %v647_v57 = vpop.f32.mrf.mxu0  ;;  %v775_v58 = vpop.f32.mrf.mxu1 }
  0xe0   : > { %1222 = vst.msk [vmem:[%s1925_s29 + $0x8] sm:$0xf] %vm1219_vm3, %v1541_v51  ;;  %1254 = vst.msk [vmem:[%s1925_s29 + $0x88] sm:$0xf] %vm1219_vm3, %v1573_v52  ;;  %v1539_v59 = vpack.c.bf16 %v899_v53, %v899_v53  ;;  %v1571_v60 = vpack.c.bf16 %v931_v54, %v931_v54  ;;  %v648_v61 = vadd.f32 %v1914_v38, %v647_v57 }
  0xe1   : > { %v776_v62 = vadd.f32 %v1914_v38, %v775_v58  ;;  %v902_v63 = vmax.f32 %v656_v55, 0.0  ;;  %v934_v0 = vmax.f32 %v784_v56, 0.0  ;;  %v1647_v1 = vpop.f32.mrf.mxu0  ;;  %v1679_v2 = vpop.f32.mrf.mxu1 }
  0xe2   : > { %1220 = vst.msk [vmem:[%s1925_s29] sm:$0xf] %vm1219_vm3, %v1539_v59  ;;  %1252 = vst.msk [vmem:[%s1925_s29 + $0x80] sm:$0xf] %vm1219_vm3, %v1571_v60  ;;  %v900_v3 = vmax.f32 %v648_v61, 0.0  ;;  %v669_v5 = vadd.f32 %v1647_v1, %v1914_v38  ;;  %v797_v6 = vadd.f32 %v1679_v2, %v1914_v38 }
  0xe3   : > { %v932_v4 = vmax.f32 %v776_v62, 0.0  ;;  %v1542_v7 = vpack.c.bf16 %v902_v63, %v902_v63  ;;  %v1574_v8 = vpack.c.bf16 %v934_v0, %v934_v0  ;;  %v660_v9 = vpop.f32.mrf.mxu0  ;;  %v788_v10 = vpop.f32.mrf.mxu1 }
  0xe4   : > { %v1540_v11 = vpack.c.bf16 %v900_v3, %v900_v3  ;;  %v905_v13 = vmax.f32 %v669_v5, 0.0  ;;  %v937_v14 = vmax.f32 %v797_v6, 0.0  ;;  %v661_v15 = vadd.f32 %v1914_v38, %v660_v9 }
  0xe5   : > { %v1572_v12 = vpack.c.bf16 %v932_v4, %v932_v4  ;;  %1223 = vst.msk [vmem:[%s1925_s29 + $0xc] sm:$0xf] %vm1219_vm3, %v1542_v7  ;;  %1255 = vst.msk [vmem:[%s1925_s29 + $0x8c] sm:$0xf] %vm1219_vm3, %v1574_v8  ;;  %v789_v16 = vadd.f32 %v1914_v38, %v788_v10  ;;  %v1648_v17 = vpop.f32.mrf.mxu0  ;;  %v1680_v18 = vpop.f32.mrf.mxu1 }
  0xe6   : > { %1221 = vst.msk [vmem:[%s1925_s29 + $0x4] sm:$0xf] %vm1219_vm3, %v1540_v11  ;;  %v1545_v19 = vpack.c.bf16 %v905_v13, %v905_v13  ;;  %v1577_v20 = vpack.c.bf16 %v937_v14, %v937_v14  ;;  %v672_v21 = vadd.f32 %v1648_v17, %v1914_v38  ;;  %v800_v22 = vadd.f32 %v1680_v18, %v1914_v38 }
  0xe7   : > { %1253 = vst.msk [vmem:[%s1925_s29 + $0x84] sm:$0xf] %vm1219_vm3, %v1572_v12  ;;  %v903_v23 = vmax.f32 %v661_v15, 0.0  ;;  %v935_v24 = vmax.f32 %v789_v16, 0.0  ;;  %v663_v25 = vpop.f32.mrf.mxu0  ;;  %v791_v26 = vpop.f32.mrf.mxu1 }
  0xe8   : > { %1226 = vst.msk [vmem:[%s1925_s29 + $0x18] sm:$0xf] %vm1219_vm3, %v1545_v19  ;;  %1258 = vst.msk [vmem:[%s1925_s29 + $0x98] sm:$0xf] %vm1219_vm3, %v1577_v20  ;;  %v906_v27 = vmax.f32 %v672_v21, 0.0  ;;  %v938_v28 = vmax.f32 %v800_v22, 0.0  ;;  %v664_v29 = vadd.f32 %v1914_v38, %v663_v25  ;;  %v792_v30 = vadd.f32 %v1914_v38, %v791_v26 }
  0xe9   : > { %v1543_v31 = vpack.c.bf16 %v903_v23, %v903_v23  ;;  %v1575_v32 = vpack.c.bf16 %v935_v24, %v935_v24  ;;  %v1651_v33 = vpop.f32.mrf.mxu0  ;;  %v1683_v34 = vpop.f32.mrf.mxu1 }
  0xea   : > { %v1546_v35 = vpack.c.bf16 %v906_v27, %v906_v27  ;;  %v1578_v36 = vpack.c.bf16 %v938_v28, %v938_v28  ;;  %v904_v37 = vmax.f32 %v664_v29, 0.0  ;;  %v936_v39 = vmax.f32 %v792_v30, 0.0 }
  0xeb   : > { %1224 = vst.msk [vmem:[%s1925_s29 + $0x10] sm:$0xf] %vm1219_vm3, %v1543_v31  ;;  %1256 = vst.msk [vmem:[%s1925_s29 + $0x90] sm:$0xf] %vm1219_vm3, %v1575_v32  ;;  %v685_v40 = vadd.f32 %v1651_v33, %v1914_v38  ;;  %v813_v41 = vadd.f32 %v1683_v34, %v1914_v38  ;;  %v676_v42 = vpop.f32.mrf.mxu0  ;;  %v804_v43 = vpop.f32.mrf.mxu1 }
  0xec   : > { %1227 = vst.msk [vmem:[%s1925_s29 + $0x1c] sm:$0xf] %vm1219_vm3, %v1546_v35  ;;  %1259 = vst.msk [vmem:[%s1925_s29 + $0x9c] sm:$0xf] %vm1219_vm3, %v1578_v36  ;;  %v1544_v44 = vpack.c.bf16 %v904_v37, %v904_v37  ;;  %v1576_v45 = vpack.c.bf16 %v936_v39, %v936_v39  ;;  %v677_v46 = vadd.f32 %v1914_v38, %v676_v42 }
  0xed   : > { %v805_v47 = vadd.f32 %v1914_v38, %v804_v43  ;;  %v909_v48 = vmax.f32 %v685_v40, 0.0  ;;  %v941_v49 = vmax.f32 %v813_v41, 0.0  ;;  %v1652_v50 = vpop.f32.mrf.mxu0  ;;  %v1684_v51 = vpop.f32.mrf.mxu1 }
  0xee   : > { %1225 = vst.msk [vmem:[%s1925_s29 + $0x14] sm:$0xf] %vm1219_vm3, %v1544_v44  ;;  %1257 = vst.msk [vmem:[%s1925_s29 + $0x94] sm:$0xf] %vm1219_vm3, %v1576_v45  ;;  %v907_v52 = vmax.f32 %v677_v46, 0.0  ;;  %v688_v54 = vadd.f32 %v1652_v50, %v1914_v38  ;;  %v816_v55 = vadd.f32 %v1684_v51, %v1914_v38 }
  0xef   : > { %v939_v53 = vmax.f32 %v805_v47, 0.0  ;;  %v1549_v56 = vpack.c.bf16 %v909_v48, %v909_v48  ;;  %v1581_v57 = vpack.c.bf16 %v941_v49, %v941_v49  ;;  %v679_v58 = vpop.f32.mrf.mxu0  ;;  %v807_v59 = vpop.f32.mrf.mxu1 }
  0xf0   : > { %v1547_v60 = vpack.c.bf16 %v907_v52, %v907_v52  ;;  %v910_v62 = vmax.f32 %v688_v54, 0.0  ;;  %v942_v63 = vmax.f32 %v816_v55, 0.0  ;;  %v680_v0 = vadd.f32 %v1914_v38, %v679_v58 }
  0xf1   : > { %v1579_v61 = vpack.c.bf16 %v939_v53, %v939_v53  ;;  %1230 = vst.msk [vmem:[%s1925_s29 + $0x28] sm:$0xf] %vm1219_vm3, %v1549_v56  ;;  %1262 = vst.msk [vmem:[%s1925_s29 + $0xa8] sm:$0xf] %vm1219_vm3, %v1581_v57  ;;  %v808_v1 = vadd.f32 %v1914_v38, %v807_v59  ;;  %v1655_v2 = vpop.f32.mrf.mxu0  ;;  %v1687_v3 = vpop.f32.mrf.mxu1 }
  0xf2   : > { %1228 = vst.msk [vmem:[%s1925_s29 + $0x20] sm:$0xf] %vm1219_vm3, %v1547_v60  ;;  %v1550_v4 = vpack.c.bf16 %v910_v62, %v910_v62  ;;  %v1582_v5 = vpack.c.bf16 %v942_v63, %v942_v63  ;;  %v701_v6 = vadd.f32 %v1655_v2, %v1914_v38  ;;  %v829_v7 = vadd.f32 %v1687_v3, %v1914_v38 }
  0xf3   : > { %1260 = vst.msk [vmem:[%s1925_s29 + $0xa0] sm:$0xf] %vm1219_vm3, %v1579_v61  ;;  %v908_v8 = vmax.f32 %v680_v0, 0.0  ;;  %v940_v9 = vmax.f32 %v808_v1, 0.0  ;;  %v692_v10 = vpop.f32.mrf.mxu0  ;;  %v820_v11 = vpop.f32.mrf.mxu1 }
  0xf4   : > { %1231 = vst.msk [vmem:[%s1925_s29 + $0x2c] sm:$0xf] %vm1219_vm3, %v1550_v4  ;;  %1263 = vst.msk [vmem:[%s1925_s29 + $0xac] sm:$0xf] %vm1219_vm3, %v1582_v5  ;;  %v913_v12 = vmax.f32 %v701_v6, 0.0  ;;  %v945_v13 = vmax.f32 %v829_v7, 0.0  ;;  %v693_v14 = vadd.f32 %v1914_v38, %v692_v10  ;;  %v821_v15 = vadd.f32 %v1914_v38, %v820_v11 }
  0xf5   : > { %v1548_v16 = vpack.c.bf16 %v908_v8, %v908_v8  ;;  %v1580_v17 = vpack.c.bf16 %v940_v9, %v940_v9  ;;  %v1656_v18 = vpop.f32.mrf.mxu0  ;;  %v1688_v19 = vpop.f32.mrf.mxu1 }
  0xf6   : > { %v1553_v20 = vpack.c.bf16 %v913_v12, %v913_v12  ;;  %v1585_v21 = vpack.c.bf16 %v945_v13, %v945_v13  ;;  %v911_v22 = vmax.f32 %v693_v14, 0.0  ;;  %v943_v23 = vmax.f32 %v821_v15, 0.0 }
  0xf7   : > { %1229 = vst.msk [vmem:[%s1925_s29 + $0x24] sm:$0xf] %vm1219_vm3, %v1548_v16  ;;  %1261 = vst.msk [vmem:[%s1925_s29 + $0xa4] sm:$0xf] %vm1219_vm3, %v1580_v17  ;;  %v704_v24 = vadd.f32 %v1656_v18, %v1914_v38  ;;  %v832_v25 = vadd.f32 %v1688_v19, %v1914_v38  ;;  %v695_v26 = vpop.f32.mrf.mxu0  ;;  %v823_v27 = vpop.f32.mrf.mxu1 }
  0xf8   : > { %1234 = vst.msk [vmem:[%s1925_s29 + $0x38] sm:$0xf] %vm1219_vm3, %v1553_v20  ;;  %1266 = vst.msk [vmem:[%s1925_s29 + $0xb8] sm:$0xf] %vm1219_vm3, %v1585_v21  ;;  %v1551_v28 = vpack.c.bf16 %v911_v22, %v911_v22  ;;  %v1583_v29 = vpack.c.bf16 %v943_v23, %v943_v23  ;;  %v696_v30 = vadd.f32 %v1914_v38, %v695_v26 }
  0xf9   : > { %v824_v31 = vadd.f32 %v1914_v38, %v823_v27  ;;  %v914_v32 = vmax.f32 %v704_v24, 0.0  ;;  %v946_v33 = vmax.f32 %v832_v25, 0.0  ;;  %v1659_v34 = vpop.f32.mrf.mxu0  ;;  %v1691_v35 = vpop.f32.mrf.mxu1 }
  0xfa   : > { %1232 = vst.msk [vmem:[%s1925_s29 + $0x30] sm:$0xf] %vm1219_vm3, %v1551_v28  ;;  %1264 = vst.msk [vmem:[%s1925_s29 + $0xb0] sm:$0xf] %vm1219_vm3, %v1583_v29  ;;  %v912_v36 = vmax.f32 %v696_v30, 0.0  ;;  %v717_v39 = vadd.f32 %v1659_v34, %v1914_v38  ;;  %v845_v40 = vadd.f32 %v1691_v35, %v1914_v38 }
  0xfb   : > { %v944_v37 = vmax.f32 %v824_v31, 0.0  ;;  %v1554_v41 = vpack.c.bf16 %v914_v32, %v914_v32  ;;  %v1586_v42 = vpack.c.bf16 %v946_v33, %v946_v33  ;;  %v708_v43 = vpop.f32.mrf.mxu0  ;;  %v836_v44 = vpop.f32.mrf.mxu1 }
  0xfc   : > { %v1552_v45 = vpack.c.bf16 %v912_v36, %v912_v36  ;;  %v917_v47 = vmax.f32 %v717_v39, 0.0  ;;  %v949_v48 = vmax.f32 %v845_v40, 0.0  ;;  %v709_v49 = vadd.f32 %v1914_v38, %v708_v43 }
  0xfd   : > { %v1584_v46 = vpack.c.bf16 %v944_v37, %v944_v37  ;;  %1235 = vst.msk [vmem:[%s1925_s29 + $0x3c] sm:$0xf] %vm1219_vm3, %v1554_v41  ;;  %1267 = vst.msk [vmem:[%s1925_s29 + $0xbc] sm:$0xf] %vm1219_vm3, %v1586_v42  ;;  %v837_v50 = vadd.f32 %v1914_v38, %v836_v44  ;;  %v1660_v51 = vpop.f32.mrf.mxu0  ;;  %v1692_v52 = vpop.f32.mrf.mxu1 }
  0xfe   : > { %1233 = vst.msk [vmem:[%s1925_s29 + $0x34] sm:$0xf] %vm1219_vm3, %v1552_v45  ;;  %v1557_v53 = vpack.c.bf16 %v917_v47, %v917_v47  ;;  %v1589_v54 = vpack.c.bf16 %v949_v48, %v949_v48  ;;  %v720_v55 = vadd.f32 %v1660_v51, %v1914_v38  ;;  %v848_v56 = vadd.f32 %v1692_v52, %v1914_v38 }
  0xff   : > { %1265 = vst.msk [vmem:[%s1925_s29 + $0xb4] sm:$0xf] %vm1219_vm3, %v1584_v46  ;;  %v915_v57 = vmax.f32 %v709_v49, 0.0  ;;  %v947_v58 = vmax.f32 %v837_v50, 0.0  ;;  %v711_v59 = vpop.f32.mrf.mxu0  ;;  %v839_v60 = vpop.f32.mrf.mxu1 }
 0x100   : > { %1238 = vst.msk [vmem:[%s1925_s29 + $0x48] sm:$0xf] %vm1219_vm3, %v1557_v53  ;;  %1270 = vst.msk [vmem:[%s1925_s29 + $0xc8] sm:$0xf] %vm1219_vm3, %v1589_v54  ;;  %v918_v61 = vmax.f32 %v720_v55, 0.0  ;;  %v950_v62 = vmax.f32 %v848_v56, 0.0  ;;  %v712_v63 = vadd.f32 %v1914_v38, %v711_v59  ;;  %v840_v0 = vadd.f32 %v1914_v38, %v839_v60 }
 0x101   : > { %v1555_v1 = vpack.c.bf16 %v915_v57, %v915_v57  ;;  %v1587_v2 = vpack.c.bf16 %v947_v58, %v947_v58  ;;  %v1663_v3 = vpop.f32.mrf.mxu0  ;;  %v1695_v4 = vpop.f32.mrf.mxu1 }
 0x102   : > { %v1558_v5 = vpack.c.bf16 %v918_v61, %v918_v61  ;;  %v1590_v6 = vpack.c.bf16 %v950_v62, %v950_v62  ;;  %v916_v7 = vmax.f32 %v712_v63, 0.0  ;;  %v948_v8 = vmax.f32 %v840_v0, 0.0 }
 0x103   : > { %1236 = vst.msk [vmem:[%s1925_s29 + $0x40] sm:$0xf] %vm1219_vm3, %v1555_v1  ;;  %1268 = vst.msk [vmem:[%s1925_s29 + $0xc0] sm:$0xf] %vm1219_vm3, %v1587_v2  ;;  %v733_v9 = vadd.f32 %v1663_v3, %v1914_v38  ;;  %v861_v10 = vadd.f32 %v1695_v4, %v1914_v38  ;;  %v724_v11 = vpop.f32.mrf.mxu0  ;;  %v852_v12 = vpop.f32.mrf.mxu1 }
 0x104   : > { %1239 = vst.msk [vmem:[%s1925_s29 + $0x4c] sm:$0xf] %vm1219_vm3, %v1558_v5  ;;  %1271 = vst.msk [vmem:[%s1925_s29 + $0xcc] sm:$0xf] %vm1219_vm3, %v1590_v6  ;;  %v1556_v13 = vpack.c.bf16 %v916_v7, %v916_v7  ;;  %v1588_v14 = vpack.c.bf16 %v948_v8, %v948_v8  ;;  %v725_v15 = vadd.f32 %v1914_v38, %v724_v11 }
 0x105   : > { %v853_v16 = vadd.f32 %v1914_v38, %v852_v12  ;;  %v921_v17 = vmax.f32 %v733_v9, 0.0  ;;  %v953_v18 = vmax.f32 %v861_v10, 0.0  ;;  %v1664_v19 = vpop.f32.mrf.mxu0  ;;  %v1696_v20 = vpop.f32.mrf.mxu1 }
 0x106   : > { %1237 = vst.msk [vmem:[%s1925_s29 + $0x44] sm:$0xf] %vm1219_vm3, %v1556_v13  ;;  %1269 = vst.msk [vmem:[%s1925_s29 + $0xc4] sm:$0xf] %vm1219_vm3, %v1588_v14  ;;  %v919_v21 = vmax.f32 %v725_v15, 0.0  ;;  %v736_v23 = vadd.f32 %v1664_v19, %v1914_v38  ;;  %v864_v24 = vadd.f32 %v1696_v20, %v1914_v38 }
 0x107   : > { %v951_v22 = vmax.f32 %v853_v16, 0.0  ;;  %v1561_v25 = vpack.c.bf16 %v921_v17, %v921_v17  ;;  %v1593_v26 = vpack.c.bf16 %v953_v18, %v953_v18  ;;  %v727_v27 = vpop.f32.mrf.mxu0  ;;  %v855_v28 = vpop.f32.mrf.mxu1 }
 0x108   : > { %v1559_v29 = vpack.c.bf16 %v919_v21, %v919_v21  ;;  %v922_v31 = vmax.f32 %v736_v23, 0.0  ;;  %v954_v32 = vmax.f32 %v864_v24, 0.0  ;;  %v728_v33 = vadd.f32 %v1914_v38, %v727_v27 }
 0x109   : > { %v1591_v30 = vpack.c.bf16 %v951_v22, %v951_v22  ;;  %1242 = vst.msk [vmem:[%s1925_s29 + $0x58] sm:$0xf] %vm1219_vm3, %v1561_v25  ;;  %1274 = vst.msk [vmem:[%s1925_s29 + $0xd8] sm:$0xf] %vm1219_vm3, %v1593_v26  ;;  %v856_v34 = vadd.f32 %v1914_v38, %v855_v28  ;;  %v1667_v35 = vpop.f32.mrf.mxu0  ;;  %v1699_v36 = vpop.f32.mrf.mxu1 }
 0x10a   : > { %1240 = vst.msk [vmem:[%s1925_s29 + $0x50] sm:$0xf] %vm1219_vm3, %v1559_v29  ;;  %v1562_v37 = vpack.c.bf16 %v922_v31, %v922_v31  ;;  %v1594_v39 = vpack.c.bf16 %v954_v32, %v954_v32  ;;  %v749_v40 = vadd.f32 %v1667_v35, %v1914_v38  ;;  %v877_v41 = vadd.f32 %v1699_v36, %v1914_v38 }
 0x10b   : > { %1272 = vst.msk [vmem:[%s1925_s29 + $0xd0] sm:$0xf] %vm1219_vm3, %v1591_v30  ;;  %v920_v42 = vmax.f32 %v728_v33, 0.0  ;;  %v952_v43 = vmax.f32 %v856_v34, 0.0  ;;  %v740_v44 = vpop.f32.mrf.mxu0  ;;  %v868_v45 = vpop.f32.mrf.mxu1 }
 0x10c   : > { %1243 = vst.msk [vmem:[%s1925_s29 + $0x5c] sm:$0xf] %vm1219_vm3, %v1562_v37  ;;  %1275 = vst.msk [vmem:[%s1925_s29 + $0xdc] sm:$0xf] %vm1219_vm3, %v1594_v39  ;;  %v925_v46 = vmax.f32 %v749_v40, 0.0  ;;  %v957_v47 = vmax.f32 %v877_v41, 0.0  ;;  %v741_v48 = vadd.f32 %v1914_v38, %v740_v44  ;;  %v869_v49 = vadd.f32 %v1914_v38, %v868_v45 }
 0x10d   : > { %v1560_v50 = vpack.c.bf16 %v920_v42, %v920_v42  ;;  %v1592_v51 = vpack.c.bf16 %v952_v43, %v952_v43  ;;  %v1668_v52 = vpop.f32.mrf.mxu0  ;;  %v1700_v53 = vpop.f32.mrf.mxu1 }
 0x10e   : > { %v1565_v54 = vpack.c.bf16 %v925_v46, %v925_v46  ;;  %v1597_v55 = vpack.c.bf16 %v957_v47, %v957_v47  ;;  %v923_v56 = vmax.f32 %v741_v48, 0.0  ;;  %v955_v57 = vmax.f32 %v869_v49, 0.0 }
 0x10f   : > { %1241 = vst.msk [vmem:[%s1925_s29 + $0x54] sm:$0xf] %vm1219_vm3, %v1560_v50  ;;  %1273 = vst.msk [vmem:[%s1925_s29 + $0xd4] sm:$0xf] %vm1219_vm3, %v1592_v51  ;;  %v752_v58 = vadd.f32 %v1668_v52, %v1914_v38  ;;  %v880_v59 = vadd.f32 %v1700_v53, %v1914_v38  ;;  %v743_v60 = vpop.f32.mrf.mxu0  ;;  %v871_v61 = vpop.f32.mrf.mxu1 }
 0x110   : > { %1246 = vst.msk [vmem:[%s1925_s29 + $0x68] sm:$0xf] %vm1219_vm3, %v1565_v54  ;;  %1278 = vst.msk [vmem:[%s1925_s29 + $0xe8] sm:$0xf] %vm1219_vm3, %v1597_v55  ;;  %v1563_v62 = vpack.c.bf16 %v923_v56, %v923_v56  ;;  %v1595_v63 = vpack.c.bf16 %v955_v57, %v955_v57  ;;  %v744_v0 = vadd.f32 %v1914_v38, %v743_v60 }
 0x111   : > { %v872_v1 = vadd.f32 %v1914_v38, %v871_v61  ;;  %v926_v2 = vmax.f32 %v752_v58, 0.0  ;;  %v958_v3 = vmax.f32 %v880_v59, 0.0  ;;  %v1671_v4 = vpop.f32.mrf.mxu0  ;;  %v1703_v5 = vpop.f32.mrf.mxu1 }
 0x112   : > { %1244 = vst.msk [vmem:[%s1925_s29 + $0x60] sm:$0xf] %vm1219_vm3, %v1563_v62  ;;  %1276 = vst.msk [vmem:[%s1925_s29 + $0xe0] sm:$0xf] %vm1219_vm3, %v1595_v63  ;;  %v924_v6 = vmax.f32 %v744_v0, 0.0  ;;  %v765_v8 = vadd.f32 %v1671_v4, %v1914_v38  ;;  %v893_v9 = vadd.f32 %v1703_v5, %v1914_v38 }
 0x113   : > { %v956_v7 = vmax.f32 %v872_v1, 0.0  ;;  %v1566_v10 = vpack.c.bf16 %v926_v2, %v926_v2  ;;  %v1598_v11 = vpack.c.bf16 %v958_v3, %v958_v3  ;;  %v756_v12 = vpop.f32.mrf.mxu0  ;;  %v884_v13 = vpop.f32.mrf.mxu1 }
 0x114   : > { %v1564_v14 = vpack.c.bf16 %v924_v6, %v924_v6  ;;  %v929_v16 = vmax.f32 %v765_v8, 0.0  ;;  %v961_v17 = vmax.f32 %v893_v9, 0.0  ;;  %v757_v18 = vadd.f32 %v1914_v38, %v756_v12 }
 0x115   : > { %v1596_v15 = vpack.c.bf16 %v956_v7, %v956_v7  ;;  %1247 = vst.msk [vmem:[%s1925_s29 + $0x6c] sm:$0xf] %vm1219_vm3, %v1566_v10  ;;  %1279 = vst.msk [vmem:[%s1925_s29 + $0xec] sm:$0xf] %vm1219_vm3, %v1598_v11  ;;  %v885_v19 = vadd.f32 %v1914_v38, %v884_v13  ;;  %v1672_v20 = vpop.f32.mrf.mxu0  ;;  %v1704_v21 = vpop.f32.mrf.mxu1 }
 0x116   : > { %1245 = vst.msk [vmem:[%s1925_s29 + $0x64] sm:$0xf] %vm1219_vm3, %v1564_v14  ;;  %v1569_v22 = vpack.c.bf16 %v929_v16, %v929_v16  ;;  %v1601_v23 = vpack.c.bf16 %v961_v17, %v961_v17  ;;  %v768_v24 = vadd.f32 %v1672_v20, %v1914_v38  ;;  %v896_v25 = vadd.f32 %v1704_v21, %v1914_v38 }
 0x117   : > { %1277 = vst.msk [vmem:[%s1925_s29 + $0xe4] sm:$0xf] %vm1219_vm3, %v1596_v15  ;;  %v927_v26 = vmax.f32 %v757_v18, 0.0  ;;  %v959_v27 = vmax.f32 %v885_v19, 0.0  ;;  %v759_v28 = vpop.f32.mrf.mxu0  ;;  %v887_v29 = vpop.f32.mrf.mxu1 }
 0x118   : > { %1250 = vst.msk [vmem:[%s1925_s29 + $0x78] sm:$0xf] %vm1219_vm3, %v1569_v22  ;;  %1282 = vst.msk [vmem:[%s1925_s29 + $0xf8] sm:$0xf] %vm1219_vm3, %v1601_v23  ;;  %v930_v30 = vmax.f32 %v768_v24, 0.0  ;;  %v962_v31 = vmax.f32 %v896_v25, 0.0  ;;  %v760_v32 = vadd.f32 %v1914_v38, %v759_v28  ;;  %v888_v33 = vadd.f32 %v1914_v38, %v887_v29 }
 0x119   : > { %v1567_v34 = vpack.c.bf16 %v927_v26, %v927_v26  ;;  %v1599_v35 = vpack.c.bf16 %v959_v27, %v959_v27 }
 0x11a   : > { %v1570_v36 = vpack.c.bf16 %v930_v30, %v930_v30  ;;  %v1602_v37 = vpack.c.bf16 %v962_v31, %v962_v31  ;;  %v928_v39 = vmax.f32 %v760_v32, 0.0  ;;  %v960_v40 = vmax.f32 %v888_v33, 0.0 }
 0x11b   : > { %1248 = vst.msk [vmem:[%s1925_s29 + $0x70] sm:$0xf] %vm1219_vm3, %v1567_v34  ;;  %1280 = vst.msk [vmem:[%s1925_s29 + $0xf0] sm:$0xf] %vm1219_vm3, %v1599_v35 }
 0x11c   : > { %1251 = vst.msk [vmem:[%s1925_s29 + $0x7c] sm:$0xf] %vm1219_vm3, %v1570_v36  ;;  %1283 = vst.msk [vmem:[%s1925_s29 + $0xfc] sm:$0xf] %vm1219_vm3, %v1602_v37  ;;  %v1568_v41 = vpack.c.bf16 %v928_v39, %v928_v39  ;;  %v1600_v42 = vpack.c.bf16 %v960_v40, %v960_v40 }
 0x11e   : > { %1249 = vst.msk [vmem:[%s1925_s29 + $0x74] sm:$0xf] %vm1219_vm3, %v1568_v41  ;;  %1281 = vst.msk [vmem:[%s1925_s29 + $0xf4] sm:$0xf] %vm1219_vm3, %v1600_v42 }
 0x11f PF: > { %s13_s14 = sadd.s32 1, %s1790_s14   ;;  %s2128_s12 = smov %s1786_s13 }
 0x120   : > { %p10_p5 = scmp.ge.s32.totalorder %s13_s14, 6   ;;  %s2129_s13 = smov %s2131_s15 }
 0x122   :  { %12 = sbr.rel (!%p10_p5) target bundleno = 2 (0x2), region = 68 }

</bundles_post_ra>
